<compile_context>
chip_gen: v5e
topology: v5e:2x2
jax: 0.10.0
libtpu: 0.0.40
codegen_flags: <defaults>
</compile_context>

<pallas_src>
import functools

import jax
import jax.numpy as jnp
from jax import lax
from jax.experimental import pallas as pl
from jax.experimental.pallas import tpu as pltpu

# Double-buffered f32 traffic per pixel: depth in (4 B) + xyz out (12 B), x2 buffers.
_BYTES_PER_PX = 2 * (4 + 12)


def _image_to_pointcloud_kernel(intr_ref, depth_ref, out_ref, *, tile_h, tile_w):
    """Projects one (tile_h, tile_w) depth tile of one batch element to 3D.

    intr_ref  : SMEM (4*B,) f32   -- [1/fx, 1/fy, cx, cy] per batch element
    depth_ref : VMEM (1, 1, tile_h, tile_w) depth block
    out_ref   : VMEM (1, 3, tile_h, tile_w) pointcloud block (x3d, y3d, z3d)
    """
    b = pl.program_id(0)
    i = pl.program_id(1)
    j = pl.program_id(2)

    base = 4 * b
    inv_fx = intr_ref[base + 0]
    inv_fy = intr_ref[base + 1]
    cx = intr_ref[base + 2]
    cy = intr_ref[base + 3]

    depth = depth_ref[0, 0]                                 # (tile_h, tile_w)

    # Per-tile scalar offsets, folded with 1/f (scalar unit, once per tile).
    off_x = ((j * tile_w).astype(jnp.float32) - cx) * inv_fx
    off_y = ((i * tile_h).astype(jnp.float32) - cy) * inv_fy

    # Pixel coordinates within the tile: u along lanes, v along sublanes.
    u = lax.broadcasted_iota(jnp.int32, (tile_h, tile_w), 1).astype(jnp.float32)
    v = lax.broadcasted_iota(jnp.int32, (tile_h, tile_w), 0).astype(jnp.float32)

    rx = u * inv_fx + off_x
    ry = v * inv_fy + off_y

    # Pinhole get_viewing_ray: ray = (rx, ry, 1) * inv_norm with inv_norm > 0,
    # hence depth / |rays_z| * rays == depth * (rx, ry, 1) -- the normalization
    # cancels exactly, so no rsqrt / abs / reciprocal is needed.
    out_ref[0, 0] = depth * rx
    out_ref[0, 1] = depth * ry
    out_ref[0, 2] = depth


def _pick_tiles(H, W, vmem_budget_bytes):
    """(8,128)-legal tiles maximizing per-step traffic under the VMEM budget."""
    # Prefer full-width tiles: each (B,3,H,W) channel slab is then one
    # contiguous tile_h*W*4 B writeback run instead of tile_h strided rows.
    if W * 8 * _BYTES_PER_PX <= vmem_budget_bytes:
        tile_w = W
    else:  # extremely wide image: fall back to a multiple-of-128 width
        tile_w = (vmem_budget_bytes // (8 * _BYTES_PER_PX) // 128) * 128
        tile_w = max(128, min(tile_w, W))

    max_h = max(8, vmem_budget_bytes // (tile_w * _BYTES_PER_PX))
    tile_h = H if H <= max_h else (max_h // 8) * 8
    return tile_h, tile_w


def image_to_pointcloud(intrinsics, batch_depth, *, vmem_budget_bytes=8 << 20,
                        tile_h=None, tile_w=None):
    """JAX/Pallas equivalent of _ImageToPointcloud.forward.

    intrinsics  : (B, 4) float32  -- [fx, fy, cx, cy] per batch (the "camera models")
    batch_depth : (B, 1, H, W) float32
    returns     : (B, 3, H, W) float32  (x3d, y3d, z3d channels)
    """
    assert batch_depth.ndim == 4, "The input batch of depth maps must have 4 dims"
    assert batch_depth.shape[1] == 1, "The input batch of depth maps must have 1 channel"
    B, _, H, W = batch_depth.shape

    # Fold 1/fx, 1/fy host-side; flatten to a 1-D SMEM scalar-prefetch array.
    intr = intrinsics.astype(jnp.float32)
    intr_flat = jnp.stack(
        [1.0 / intr[:, 0], 1.0 / intr[:, 1], intr[:, 2], intr[:, 3]], axis=1
    ).reshape(-1)

    auto_h, auto_w = _pick_tiles(H, W, vmem_budget_bytes)
    tile_h = auto_h if tile_h is None else tile_h
    tile_w = auto_w if tile_w is None else tile_w

    kernel = functools.partial(
        _image_to_pointcloud_kernel, tile_h=tile_h, tile_w=tile_w)

    # Raise the scoped-VMEM limit only if the double-buffered footprint needs it
    # (never assume more than the 64 MiB physical VMEM of v7x).
    footprint = _BYTES_PER_PX * tile_h * tile_w
    compiler_kwargs = dict(
        dimension_semantics=("parallel", "parallel", "parallel"))
    if footprint > (12 << 20):
        compiler_kwargs["vmem_limit_bytes"] = min(footprint + (4 << 20), 64 << 20)

    out = pl.pallas_call(
        kernel,
        out_shape=jax.ShapeDtypeStruct((B, 3, H, W), jnp.float32),
        grid_spec=pltpu.PrefetchScalarGridSpec(
            num_scalar_prefetch=1,  # intrinsics land in SMEM
            grid=(B, pl.cdiv(H, tile_h), pl.cdiv(W, tile_w)),
            in_specs=[
                pl.BlockSpec((1, 1, tile_h, tile_w),
                             lambda b, i, j, intr: (b, 0, i, j)),
            ],
            out_specs=pl.BlockSpec((1, 3, tile_h, tile_w),
                                   lambda b, i, j, intr: (b, 0, i, j)),
        ),
        compiler_params=pltpu.CompilerParams(**compiler_kwargs),
    )(intr_flat, batch_depth.astype(jnp.float32))
    return out


def _reference(intrinsics, batch_depth):
    """Pure-JAX mirror of the PyTorch forward (pinhole get_viewing_ray)."""
    B, _, H, W = batch_depth.shape
    u2d = jnp.broadcast_to(jnp.arange(W, dtype=jnp.float32)[None, :], (H, W))
    v2d = jnp.broadcast_to(jnp.arange(H, dtype=jnp.float32)[:, None], (H, W))
    fx = intrinsics[:, 0][:, None, None]
    fy = intrinsics[:, 1][:, None, None]
    cx = intrinsics[:, 2][:, None, None]
    cy = intrinsics[:, 3][:, None, None]
    rx = (u2d[None] - cx) / fx
    ry = (v2d[None] - cy) / fy
    inv_norm = lax.rsqrt(rx * rx + ry * ry + 1.0)
    rays_x = rx * inv_norm
    rays_y = ry * inv_norm
    rays_z = jnp.broadcast_to(inv_norm, rx.shape)
    depth = batch_depth[:, 0]
    x3d = depth / jnp.abs(rays_z) * rays_x
    y3d = depth / jnp.abs(rays_z) * rays_y
    z3d = depth / jnp.abs(rays_z) * rays_z
    return jnp.stack([x3d, y3d, z3d], axis=1)


if __name__ == "__main__":
    key = jax.random.PRNGKey(0)
    k1, k2 = jax.random.split(key)

    def make_inputs(B, H, W, k):
        depth = jax.random.uniform(
            k, (B, 1, H, W), dtype=jnp.float32, minval=0.1, maxval=5.0)
        intr = jnp.stack(
            [jnp.array([100.0 + 10.0 * i, 110.0 + 10.0 * i,
                        (W - 1) / 2.0, (H - 1) / 2.0], dtype=jnp.float32)
             for i in range(B)],
            axis=0)
        return intr, depth

    # Case 1: small shapes, full-image tile (tile_h == H, tile_w == W).
    intr1, depth1 = make_inputs(2, 16, 128, k1)
    out1 = jax.block_until_ready(image_to_pointcloud(intr1, depth1))
    ref1 = _reference(intr1, depth1)
    assert out1.shape == (2, 3, 16, 128)
    assert jnp.allclose(out1, ref1, atol=1e-4, rtol=1e-4), (
        "case1 max abs err = %g" % float(jnp.max(jnp.abs(out1 - ref1))))

    # Case 2: non-divisible H with a forced small tile_h -> exercises partial
    # (masked-writeback) tiles before relying on larger default tiles.
    intr2, depth2 = make_inputs(2, 20, 128, k2)
    out2 = jax.block_until_ready(image_to_pointcloud(intr2, depth2, tile_h=8))
    ref2 = _reference(intr2, depth2)
    assert out2.shape == (2, 3, 20, 128)
    assert jnp.allclose(out2, ref2, atol=1e-4, rtol=1e-4), (
        "case2 max abs err = %g" % float(jnp.max(jnp.abs(out2 - ref2))))

    print("KERNEL_OK")
</pallas_src>

<mosaic_0001>
module attributes {stable_mosaic.version = 11 : i64} {
  func.func @_image_to_pointcloud_kernel(%arg0: i32, %arg1: i32, %arg2: i32, %arg3: memref<8xf32, #tpu.memory_space<smem>>, %arg4: memref<1x1x16x128xf32, #tpu.memory_space<vmem>>, %arg5: memref<1x3x16x128xf32, #tpu.memory_space<vmem>>) attributes {dimension_semantics = [#tpu.dimension_semantics<parallel>, #tpu.dimension_semantics<parallel>, #tpu.dimension_semantics<parallel>], iteration_bounds = array<i64: 2, 1, 1>, scalar_prefetch = 1 : i64, scratch_operands = 0 : i64, tpu.core_type = #tpu.core_type<tc>, window_params = [{transform_indices = @transform_0, window_bounds = array<i64: 1, 1, 16, 128>}, {transform_indices = @transform_1, window_bounds = array<i64: 1, 3, 16, 128>}]} {
    %c4_i32 = arith.constant 4 : i32
    %0 = arith.muli %c4_i32, %arg0 : i32
    %c0_i32 = arith.constant 0 : i32
    %1 = arith.addi %0, %c0_i32 : i32
    %2 = arith.index_cast %1 : i32 to index
    %3 = memref.load %arg3[%2] : memref<8xf32, #tpu.memory_space<smem>>
    %c1_i32 = arith.constant 1 : i32
    %4 = arith.addi %0, %c1_i32 : i32
    %5 = arith.index_cast %4 : i32 to index
    %6 = memref.load %arg3[%5] : memref<8xf32, #tpu.memory_space<smem>>
    %c2_i32 = arith.constant 2 : i32
    %7 = arith.addi %0, %c2_i32 : i32
    %8 = arith.index_cast %7 : i32 to index
    %9 = memref.load %arg3[%8] : memref<8xf32, #tpu.memory_space<smem>>
    %c3_i32 = arith.constant 3 : i32
    %10 = arith.addi %0, %c3_i32 : i32
    %11 = arith.index_cast %10 : i32 to index
    %12 = memref.load %arg3[%11] : memref<8xf32, #tpu.memory_space<smem>>
    %c0 = arith.constant 0 : index
    %c0_0 = arith.constant 0 : index
    %c0_1 = arith.constant 0 : index
    %c0_2 = arith.constant 0 : index
    %13 = vector.load %arg4[%c0, %c0_0, %c0_1, %c0_2] : memref<1x1x16x128xf32, #tpu.memory_space<vmem>>, vector<1x1x16x128xf32>
    %14 = vector.shape_cast %13 : vector<1x1x16x128xf32> to vector<16x128xf32>
    %c128_i32 = arith.constant 128 : i32
    %15 = arith.muli %arg2, %c128_i32 : i32
    %16 = arith.sitofp %15 : i32 to f32
    %17 = arith.subf %16, %9 : f32
    %18 = arith.mulf %17, %3 : f32
    %c16_i32 = arith.constant 16 : i32
    %19 = arith.muli %arg1, %c16_i32 : i32
    %20 = arith.sitofp %19 : i32 to f32
    %21 = arith.subf %20, %12 : f32
    %22 = arith.mulf %21, %6 : f32
    %23 = tpu.iota {dimensions = array<i32: 1>} : vector<16x128xi32>
    %24 = arith.sitofp %23 : vector<16x128xi32> to vector<16x128xf32>
    %25 = tpu.iota {dimensions = array<i32: 0>} : vector<16x128xi32>
    %26 = arith.sitofp %25 : vector<16x128xi32> to vector<16x128xf32>
    %27 = vector.broadcast %3 : f32 to vector<16x128xf32>
    %28 = arith.mulf %24, %27 : vector<16x128xf32>
    %29 = vector.broadcast %18 : f32 to vector<16x128xf32>
    %30 = arith.addf %28, %29 : vector<16x128xf32>
    %31 = vector.broadcast %6 : f32 to vector<16x128xf32>
    %32 = arith.mulf %26, %31 : vector<16x128xf32>
    %33 = vector.broadcast %22 : f32 to vector<16x128xf32>
    %34 = arith.addf %32, %33 : vector<16x128xf32>
    %35 = arith.mulf %14, %30 : vector<16x128xf32>
    %c0_3 = arith.constant 0 : index
    %c0_4 = arith.constant 0 : index
    %c0_5 = arith.constant 0 : index
    %c0_6 = arith.constant 0 : index
    %36 = vector.load %arg5[%c0_3, %c0_4, %c0_5, %c0_6] : memref<1x3x16x128xf32, #tpu.memory_space<vmem>>, vector<1x1x16x128xf32>
    %37 = vector.shape_cast %36 : vector<1x1x16x128xf32> to vector<16x128xf32>
    %38 = vector.shape_cast %35 : vector<16x128xf32> to vector<1x1x16x128xf32>
    tpu.vector_store %arg5[%c0_3, %c0_4, %c0_5, %c0_6], %38 {strides = array<i32>} : memref<1x3x16x128xf32, #tpu.memory_space<vmem>>, vector<1x1x16x128xf32>,
    %39 = arith.mulf %14, %34 : vector<16x128xf32>
    %c0_7 = arith.constant 0 : index
    %c1 = arith.constant 1 : index
    %c0_8 = arith.constant 0 : index
    %c0_9 = arith.constant 0 : index
    %40 = vector.load %arg5[%c0_7, %c1, %c0_8, %c0_9] : memref<1x3x16x128xf32, #tpu.memory_space<vmem>>, vector<1x1x16x128xf32>
    %41 = vector.shape_cast %40 : vector<1x1x16x128xf32> to vector<16x128xf32>
    %42 = vector.shape_cast %39 : vector<16x128xf32> to vector<1x1x16x128xf32>
    tpu.vector_store %arg5[%c0_7, %c1, %c0_8, %c0_9], %42 {strides = array<i32>} : memref<1x3x16x128xf32, #tpu.memory_space<vmem>>, vector<1x1x16x128xf32>,
    %c0_10 = arith.constant 0 : index
    %c2 = arith.constant 2 : index
    %c0_11 = arith.constant 0 : index
    %c0_12 = arith.constant 0 : index
    %43 = vector.load %arg5[%c0_10, %c2, %c0_11, %c0_12] : memref<1x3x16x128xf32, #tpu.memory_space<vmem>>, vector<1x1x16x128xf32>
    %44 = vector.shape_cast %43 : vector<1x1x16x128xf32> to vector<16x128xf32>
    %45 = vector.shape_cast %14 : vector<16x128xf32> to vector<1x1x16x128xf32>
    tpu.vector_store %arg5[%c0_10, %c2, %c0_11, %c0_12], %45 {strides = array<i32>} : memref<1x3x16x128xf32, #tpu.memory_space<vmem>>, vector<1x1x16x128xf32>,
    return
  }
  func.func @transform_0(%arg0: i32, %arg1: i32, %arg2: i32, %arg3: memref<8xf32, #tpu.memory_space<smem>>) -> (i32, i32, i32, i32) {
    %c0_i32 = arith.constant 0 : i32
    %c0_i32_0 = arith.constant 0 : i32
    return %arg0, %c0_i32, %arg1, %arg2 : i32, i32, i32, i32
  }
  func.func @transform_1(%arg0: i32, %arg1: i32, %arg2: i32, %arg3: memref<8xf32, #tpu.memory_space<smem>>) -> (i32, i32, i32, i32) {
    %c0_i32 = arith.constant 0 : i32
    %c0_i32_0 = arith.constant 0 : i32
    return %arg0, %c0_i32, %arg1, %arg2 : i32, i32, i32, i32
  }
}

</mosaic_0001>

<bundles_post_ra>
// kernel: tpu_custom_call.1
= control target key start
LH: loop header
LB: loop body
LE: loop exit
PB: predicated region body
PF: predicated region fallthrough
CT: control target
= control target key end

     0   :  { %s552_s12 = smov [#allocation3]   ;;  %s706_s0 = inlined_call_operand.hbm [shape: f32[8], index: 0, kind: input, shape index: {}]   ;;  %s707_s1 = inlined_call_operand.hbm [shape: f32[2,1,16,128], index: 1, kind: input, shape index: {}]   ;;  %s708_s2 = inlined_call_operand.hbm [shape: f32[2,3,16,128], index: 2, kind: output, shape index: {}]  }
   0x1   :  { %s8_s11 = sshll.u32 %s706_s0, 4  ;;  %s9_s11 = int_to_ptr.hbm [resolvable:$true] %s8_s11 }
   0x2   :  { %11 = dma.hbm_to_smem %s9_s11, 16, %s552_s12, [#allocation2] }
   0x3   :  { %518 = dma.done.wait [#allocation2], 16 }
   0x4   :  { %519 = vsyncadd [#allocation2], 4294967280 }
   0x5   :  { %14 = sfence }
   0x6   :  { %15 = vsyncpa [#allocation5], 0 }
   0x7   :  { %17 = vsyncpa [#allocation5 + $0x1], 0 }
   0x8   :  { %18 = vsyncpa [#allocation6], 0 }
   0x9   :  { %20 = vsyncpa [#allocation6 + $0x1], 0  ;;  %s575_s13 = smov 0   ;;  %s577_s14 = smov 0  }
   0xa   :  { %s579_s15 = smov 0   ;;  %s581_s16 = smov 0  }
   0xb   :  { %s583_s17 = smov 0   ;;  %s585_s0 = smov 0  }
   0xc LB: > { %s337_s18 = sadd.s32 4294967295, %s550_s0   ;;  %s338_s19 = sadd.s32 4294967294, %s550_s0   ;;  %s550_s0 = sphi %s585_s0, %s26_s0   ;;  %s546_s17 = sphi %s583_s17, %s717_s17   ;;  %s542_s16 = sphi %s581_s16, %s716_s16   ;;  %s538_s15 = sphi %s579_s15, %s715_s15   ;;  %s534_s14 = sphi %s577_s14, %s714_s14   ;;  %s530_s13 = sphi %s575_s13, %s713_s13  }
   0xd   : > { %s45_s20 = sadd.s32 1, %s546_s17  ;;  %s56_s21 = sadd.s32 1, %s538_s15 }
   0xe   : > { %p47_p0 = scmp.ge.s32.totalorder %s45_s20, 2  ;;  %p63_p1 = scmp.ne.s32.totalorder %s538_s15, %s534_s14 }
   0xf   : > { %p64_p2 = scmp.eq.s32.totalorder %s550_s0, 0  ;;  %p69_p3 = scmp.ne.s32.totalorder %s534_s14, %s530_s13 }
  0x10   : > { %s719_s20 = smov (%p47_p0, %s45_s20), 0  ;;  %p70_p5 = scmp.eq.s32.totalorder %s337_s18, 0 }
  0x11   : > { %p616_p4 = por %p64_p2, %p63_p1  ;;  %s49_s23 = ssub.s32 %s546_s17, %s719_s20 }
  0x12   : > { %p97_p6 = scmp.eq.s32.totalorder %s337_s18, 1  ;;  %p54_p7 = scmp.eq.s32.totalorder %s49_s23, 0 }
  0x13   : > { %p622_p8 = por %p70_p5, %p69_p3  ;;  %p103_p10 = scmp.eq.s32.totalorder %s338_s19, 1 }
  0x14   : > { %p626_p9 = por %p97_p6, %p63_p1  ;;  %p340_p12 = scmp.ge.s32.totalorder %s550_s0, 2 }
  0x15   : > { %s631_s26 = scalar_select %p54_p7, %s538_s15, %s56_s21  }
  0x16   : > { %p633_p11 = por %p103_p10, %p69_p3  ;;  %p369_p13 = scmp.lt.s32.totalorder %s550_s0, 2 }
  0x17   : > { %s123_s28 = sand.u32 1, %s538_s15   ;;  %s354_s30 = sshll.u32 %s546_s17, 4 }
  0x18   : > { %s341_s29 = sshll.u32 %s123_s28, 4  ;;  %s135_s5 = scalar_lea.hbm %s707_s1, %s354_s30 }
  0x19   : > { %s127_s6 = scalar_lea.vmem [#allocation4], %s341_s29  ;;  %s136_s8 = sshll.u32 %s135_s5, 4  ;;  %s137_s8 = int_to_ptr.hbm [resolvable:$true] %s136_s8 }
  0x1a   : > { %s138_s7 = sshll.u32 %s127_s6, 4  ;;  %p362_p0 = pnand %p369_p13, %p616_p4  ;;  %s139_s7 = int_to_ptr.vmem [resolvable:$true] %s138_s7 }
  0x1b   : > { %p344_p1 = scmp.ge.s32.totalorder %s550_s0, 1  ;;  %s124_s9 = scalar_lea.sflag [#allocation5], %s123_s28 }
  0x1c   : > { %s553_s10 = smov 128   ;;  %s554_s11 = smov 8  }
  0x1d   : > { %364 = dma.hbm_to_vmem [thread:$0]  (!%p362_p0), %s137_s8, 256, %s139_s7, %s124_s9, %s553_s10, %s553_s10, %s554_s11  }
  0x1e   : > { %p146_p2 = scmp.lt.s32.totalorder %s550_s0, 3 }
  0x20   : > { %p147_p3 = pnand %p344_p1, %p146_p2 }
  0x21   : > { %s649_s12 = sand.u32 (!%p147_p3), 1, %s534_s14  }
  0x22   : > { %150 = sbr.rel (%p147_p3) target bundleno = 64 (0x40), region = 24  ;;  %s345_s18 = sshll.u32 (!%p147_p3), %s649_s12, 4 }
  0x23   : > { %s153_s19 = scalar_lea.sflag (!%p147_p3), [#allocation5], %s649_s12  ;;  %s156_s21 = scalar_lea.vmem (!%p147_p3), [#allocation4], %s345_s18 }
  0x27   : > { %521 = dma.done.wait (%p622_p8), %s153_s19, 256  }
  0x28   : > { %523 = vsyncadd (%p622_p8), %s153_s19, 4294967040  ;;  %s355_s22 = smul.u32 48, %s649_s12  ;;  %s346_s23 = sshll.u32 %s542_s16, 2  ;;  %v196_v0 = vlaneseq  ;;  %v186_v5 = vld [vmem:[%s156_s21] sm:$0xff]  ;;  %v187_v7 = vld [vmem:[%s156_s21 + $0x8] sm:$0xff] }
  0x29   : > { %s179_s28 = sld [smem:[#allocation3 + %s346_s23]]  ;;  %s182_s29 = sadd.s32 2, %s346_s23 }
  0x2a   : > { %s183_s30 = sld [smem:[#allocation3 + %s182_s29]]  ;;  %v197_v1 = vand.u32 127, %v196_v0  ;;  %v200_v2 = vshrl.u32 %v196_v0, 7  ;;  %s180_s3 = sadd.s32 1, %s346_s23 }
  0x2b   : > { %s181_s4 = sld [smem:[#allocation3 + %s180_s3]]  ;;  %s184_s5 = sadd.s32 3, %s346_s23 }
  0x2c   : > { %v198_v3 = vcvt.s32.f32 %v197_v1  ;;  %v201_v4 = vadd.s32 8, %v200_v2  ;;  %s185_s6 = sld [smem:[#allocation3 + %s184_s5]]  ;;  %s659_s7 = scalar_lea.vmem [#allocation7], %s355_s22  ;;  %v202_v9 = vcvt.s32.f32 %v200_v2 }
  0x2d   : > { %349 = vst [vmem:[%s659_s7 + $0x20] sm:$0xff] %v186_v5  ;;  %s356_s8 = smul.u32 48, %s542_s16  ;;  %s242_s22 = sshll.u32 %s659_s7, 4  ;;  %s243_s22 = int_to_ptr.vmem [resolvable:$true] %s242_s22 }
  0x2e   : > { %350 = vst [vmem:[%s659_s7 + $0x28] sm:$0xff] %v187_v7  ;;  %v203_v10 = vcvt.s32.f32 %v201_v4  ;;  %s227_s23 = scalar_lea.sflag [#allocation6], %s649_s12 }
  0x2f   : > { %v204_v6 = vstv %s179_s28  ;;  %s241_s21 = scalar_lea.hbm %s708_s2, %s356_s8 }
  0x30   : > { %s190_s24 = ssub.f32 0.0, %s183_s30  ;;  %v205_v8 = vmul.f32 %v204_v6, %v198_v3  ;;  %s244_s16 = sshll.u32 %s241_s21, 4  ;;  %s245_s16 = int_to_ptr.hbm [resolvable:$true] %s244_s16 }
  0x31   : > { %v208_v11 = vstv %s181_s4 }
  0x32   : > { %s191_s9 = smul.f32 %s190_s24, %s179_s28  ;;  %s194_s10 = ssub.f32 0.0, %s185_s6  ;;  %v209_v14 = vmul.f32 %v208_v11, %v202_v9  ;;  %v210_v15 = vmul.f32 %v208_v11, %v203_v10 }
  0x33   : > { %s480_s28 = sshra.s32 %s245_s16, 4  ;;  %s481_s28 = int_to_ptr.hbm [resolvable:$true] %s480_s28 }
  0x34   : > { %v206_v12 = vstv %s191_s9  ;;  %s195_s11 = smul.f32 %s194_s10, %s181_s4  ;;  %s482_s29 = scalar_lea.hbm %s481_s28, 48 }
  0x35   : > { %v207_v13 = vadd.f32 %v206_v12, %v205_v8  ;;  %p483_p4 = scmp.ne.s32.totalorder %s481_s28, %s482_s29  ;;  %s486_s4 = scalar_lea.hbm %s708_s2, 96 }
  0x36   : > { %v211_v18 = vstv %s195_s11  ;;  %p487_p7 = scmp.lt.s32.totalorder %s481_s28, %s708_s2  ;;  %p488_p8 = scmp.lt.s32.totalorder %s486_s4, %s482_s29 }
  0x37   : > { %v214_v16 = vmul.f32 %v207_v13, %v186_v5  ;;  %v215_v17 = vmul.f32 %v207_v13, %v187_v7  ;;  %v212_v19 = vadd.f32 %v211_v18, %v209_v14  ;;  %v213_v20 = vadd.f32 %v211_v18, %v210_v15  ;;  %p484_p5 = pnand %p483_p4, %p626_p9 }
  0x38   : > { %p489_p10 = por %p488_p8, %p487_p7 }
  0x39   : > { %216 = vst [vmem:[%s659_s7] sm:$0xff] %v214_v16  ;;  %v218_v21 = vmul.f32 %v212_v19, %v186_v5  ;;  %v219_v22 = vmul.f32 %v213_v20, %v187_v7  ;;  %p485_p6 = pneg %p484_p5 }
  0x3a   : > { %217 = vst [vmem:[%s659_s7 + $0x8] sm:$0xff] %v215_v17 }
  0x3b   : > { %347 = vst [vmem:[%s659_s7 + $0x10] sm:$0xff] %v218_v21  ;;  %p490_p13 = pnand %p489_p10, %p485_p6 }
  0x3c   : > { %348 = vst [vmem:[%s659_s7 + $0x18] sm:$0xff] %v219_v22 }
  0x3d   : > { %493 = shalt.err (!%p490_p13)
}
  0x3e   : > { %s555_s12 = smov 128   ;;  %s556_s24 = smov 8  }
  0x3f   : > { %359 = dma.vmem_to_hbm [thread:$0]  (%p626_p9), %s243_s22, 768, %s245_s16, %s227_s23, %s555_s12, %s555_s12, %s556_s24  }
  0x40 PF: > { %s259_s7 = sand.u32 1, %s530_s13   ;;  %p366_p0 = pnand %p340_p12, %p633_p11 }
  0x41   : > { %s260_s8 = scalar_lea.sflag [#allocation6], %s259_s7 }
  0x42   : > { %p367_p1 = pneg %p366_p0 }
  0x44   : > { %525 = dma.done.wait (%p367_p1), %s260_s8, 768  }
  0x45   : > { %527 = vsyncadd (%p367_p1), %s260_s8, 4294966528  ;;  %s26_s0 = sadd.s32 1, %s550_s0   ;;  %s713_s13 = smov %s534_s14 }
  0x46   : > { %p23_p2 = scmp.ge.s32.totalorder %s26_s0, 4   ;;  %s714_s14 = smov %s538_s15 }
  0x47   : > { %s715_s15 = smov %s631_s26  ;;  %s716_s16 = smov %s546_s17 }
  0x48   : > { %s717_s17 = smov %s719_s20  ;;  %25 = sbr.rel (!%p23_p2) target bundleno = 12 (0xc), region = 71 }
  0x4d   :  { %266 = vsyncpa [#allocation5], 1 }
  0x4e   :  { %268 = vsyncpa [#allocation5 + $0x1], 1 }
  0x4f   :  { %269 = vsyncpa [#allocation6], 1 }
  0x50   :  { %271 = vsyncpa [#allocation6 + $0x1], 1 }

</bundles_post_ra>
